<compile_context>
chip_gen: v6e
topology: v6e:2x2x1
jax: 0.10.0
libtpu: 0.0.40
codegen_flags: <defaults>
</compile_context>

<pallas_src>
import math

import jax
import jax.numpy as jnp
from jax.experimental import pallas as pl
from jax.experimental.pallas import tpu as pltpu

# bf16 dense adjacencies (row-stochastic, values <= 1) -> halves the N^2 bytes.
ADJ_BF16 = True
# bf16 operands for the feature/weight matmuls (f32 accumulate).  Recommended True
# on v6e/v7x (bf16-native MXU); kept False by default for exact-f32 weight path.
MXU_BF16 = False


# ------------------------- in-kernel building blocks --------------------------

def _wdot(a, b):
    if MXU_BF16:
        a = a.astype(jnp.bfloat16)
        b = b.astype(jnp.bfloat16)
    return jnp.dot(a, b, preferred_element_type=jnp.float32)


def _adot(a, b):
    # `a` is the (possibly bf16) adjacency; match the activation's dtype to it so the
    # MXU runs a homogeneous bf16xbf16 (or f32xf32) contraction with f32 accumulation.
    return jnp.dot(a, b.astype(a.dtype), preferred_element_type=jnp.float32)


def _rgcn_branch_kernel(counts_ref,                       # SMEM (2,) int32, scalar prefetch
                        x_ref, a_ref, pool_ref,
                        w1_ref, vec1_ref, w2_ref, vec2_ref,
                        o_ref):
    b = pl.program_id(0)
    n_real = counts_ref[b]                                # real-node count of this branch
    inv_n = 1.0 / n_real.astype(jnp.float32)

    x = x_ref[...]                                        # (Nmax, Fmax) f32
    a0 = a_ref[0]                                         # (Nmax, Nmax) bf16/f32
    a1 = a_ref[1]

    n_pad = x.shape[0]
    row_id = jax.lax.broadcasted_iota(jnp.int32, (n_pad, 1), 0)
    mask = (row_id < n_real).astype(jnp.float32)          # (Nmax, 1) real-node mask

    def conv(h, w_ref, bias):
        # x@W first (per review): three small K=F dots, then the dominant N^2
        # contraction runs over out_dim; no runtime concat along the lane axis.
        xw0 = _wdot(h, w_ref[0])
        xw1 = _wdot(h, w_ref[1])
        xwr = _wdot(h, w_ref[2])
        return _adot(a0, xw0) + _adot(a1, xw1) + xwr + bias

    def bn_lrelu(h, gamma, beta):
        # training-mode BatchNorm1d (biased variance, eps=1e-5) over REAL nodes only,
        # then LeakyReLU(0.01).  Kept in f32 on the VPU (v5e has no bf16 VPU).
        mean = jnp.sum(h * mask, axis=0, keepdims=True) * inv_n
        diff = h - mean
        var = jnp.sum(diff * diff * mask, axis=0, keepdims=True) * inv_n
        y = diff * jax.lax.rsqrt(var + 1e-5) * gamma + beta
        return jnp.where(y > 0, y, 0.01 * y)

    h = bn_lrelu(conv(x, w1_ref, vec1_ref[0:1, :]), vec1_ref[1:2, :], vec1_ref[2:3, :])
    h = bn_lrelu(conv(h, w2_ref, vec2_ref[0:1, :]), vec2_ref[1:2, :], vec2_ref[2:3, :])

    # scatter_mean: one-hot pooling matmul + EXACT per-graph 1/count (review note).
    pool = pool_ref[...]                                  # (B, Nmax) f32, zero cols on padding
    cnt = jnp.sum(pool, axis=1, keepdims=True)
    out = jnp.dot(pool, h, preferred_element_type=jnp.float32) / jnp.maximum(cnt, 1.0)
    o_ref[...] = out.astype(o_ref.dtype)


# ------------------------- graph preprocessing (plain-JAX glue) ---------------

def build_rel_adj(edge_index, edge_type, num_nodes, rel):
    # A[i, j] = multiplicity of edge (j -> i) with type `rel`, row-normalized by in-degree.
    src, dst = edge_index[0], edge_index[1]
    m = (edge_type == rel).astype(jnp.float32)
    a = jnp.zeros((num_nodes, num_nodes), jnp.float32).at[dst, src].add(m)
    deg = jnp.sum(a, axis=1, keepdims=True)
    return a / jnp.maximum(deg, 1.0)


def build_pool_onehot(batch, num_graphs):
    # Unnormalized one-hot assignment matrix (B, N); 1/count applied inside the kernel.
    return (batch[None, :] == jnp.arange(num_graphs)[:, None]).astype(jnp.float32)


def _pad_to(a, shape):
    pads = [(0, t - s) for s, t in zip(a.shape, shape)]
    return jnp.pad(a, pads)


# ------------------------- parameter init ------------------------------------

def init_rgcn_conv_params(key, in_dim, out_dim, num_relations=2):
    k0, k1, k2 = jax.random.split(key, 3)
    scale = 1.0 / jnp.sqrt(jnp.float32(in_dim))
    w_rel = jax.random.normal(k0, (num_relations, in_dim, out_dim), jnp.float32) * scale
    w_root = jax.random.normal(k1, (in_dim, out_dim), jnp.float32) * scale
    bias = jax.random.normal(k2, (out_dim,), jnp.float32) * 0.01
    return w_rel[0], w_rel[1], w_root, bias


def init_bn_params(key, dim):
    k0, k1 = jax.random.split(key, 2)
    gamma = 1.0 + 0.1 * jax.random.normal(k0, (dim,), jnp.float32)
    beta = 0.1 * jax.random.normal(k1, (dim,), jnp.float32)
    return gamma, beta


# ------------------------- fused, branch-parallel forward ---------------------

def _vmem_budget(inputs, out_shape):
    # One branch-slice per grid step, double-buffered by the pipeliner, + headroom.
    per_step = sum(math.prod(a.shape[1:]) * a.dtype.itemsize for a in inputs)
    per_step += math.prod(out_shape.shape[1:]) * jnp.dtype(out_shape.dtype).itemsize
    budget = 2 * per_step + (4 << 20)
    return int(min(max(budget, 8 << 20), 64 << 20))      # cap at v7x physical VMEM


def rgcn_forward(params, data):
    num_graphs = data["num_graphs"]
    x_t, x_p = data["x_t"], data["x_p"]
    n_t, f_t = x_t.shape
    n_p, f_p = x_p.shape
    n_max, f_max = max(n_t, n_p), max(f_t, f_p)
    hid = params["text_conv1"][0].shape[1]
    out_dim = params["text_conv2"][0].shape[1]
    adj_dtype = jnp.bfloat16 if ADJ_BF16 else jnp.float32

    def branch_tensors(x, edge_index, edge_type, batch, conv1, bn1, conv2, bn2):
        n = x.shape[0]
        a = jnp.stack([build_rel_adj(edge_index, edge_type, n, r) for r in (0, 1)])
        a = _pad_to(a, (2, n_max, n_max)).astype(adj_dtype)
        pool = _pad_to(build_pool_onehot(batch, num_graphs), (num_graphs, n_max))
        xp = _pad_to(x, (n_max, f_max)).astype(jnp.float32)
        w1 = jnp.stack([_pad_to(w, (f_max, hid)) for w in conv1[:3]])    # (3, Fmax, hid)
        w2 = jnp.stack(list(conv2[:3]))                                  # (3, hid, out)
        vec1 = jnp.stack([conv1[3], bn1[0], bn1[1]])                     # (3, hid) bias/gamma/beta
        vec2 = jnp.stack([conv2[3], bn2[0], bn2[1]])                     # (3, out)
        return xp, a, pool, w1, vec1, w2, vec2

    bt = branch_tensors(x_t, data["edge_index_t"], data["edge_type_t"], data["x_t_batch"],
                        params["text_conv1"], params["text_bn1"],
                        params["text_conv2"], params["text_bn2"])
    bp = branch_tensors(x_p, data["edge_index_p"], data["edge_type_p"], data["x_p_batch"],
                        params["prop_conv1"], params["prop_bn1"],
                        params["prop_conv2"], params["prop_bn2"])

    # Stack the two branches along a leading "branch" axis -> 7 tensor inputs total.
    stacked = [jnp.stack([t, p]) for t, p in zip(bt, bp)]
    counts = jnp.array([n_t, n_p], jnp.int32)             # scalar-prefetch (SMEM)

    def bspec(arr):
        nd = arr.ndim
        block = (None,) + arr.shape[1:]                   # squeeze the branch dim
        return pl.BlockSpec(block, lambda b, counts_ref, _nd=nd: (b,) + (0,) * (_nd - 1))

    out_shape = jax.ShapeDtypeStruct((2, num_graphs, out_dim), jnp.float32)
    out_spec = pl.BlockSpec((None, num_graphs, out_dim), lambda b, counts_ref: (b, 0, 0))

    grid_spec = pltpu.PrefetchScalarGridSpec(
        num_scalar_prefetch=1,
        grid=(2,),
        in_specs=[bspec(a) for a in stacked],
        out_specs=out_spec,
    )

    out = pl.pallas_call(
        _rgcn_branch_kernel,
        out_shape=out_shape,
        grid_spec=grid_spec,
        compiler_params=pltpu.CompilerParams(
            dimension_semantics=("parallel",),
            vmem_limit_bytes=_vmem_budget(stacked, out_shape),
        ),
    )(counts, *stacked)

    return out[0], out[1]


# ------------------------- pure-JAX reference (f32, exact) --------------------

def rgcn_reference(params, data):
    def branch(x, ei, et, batch, conv1, bn1, conv2, bn2):
        n = x.shape[0]
        a0 = build_rel_adj(ei, et, n, 0)
        a1 = build_rel_adj(ei, et, n, 1)

        def conv(h, p):
            w0, w1, wr, bias = p
            return a0 @ (h @ w0) + a1 @ (h @ w1) + h @ wr + bias

        def bn_lrelu(h, p):
            g, be = p
            m = jnp.mean(h, axis=0, keepdims=True)
            v = jnp.mean((h - m) ** 2, axis=0, keepdims=True)
            y = (h - m) * jax.lax.rsqrt(v + 1e-5) * g + be
            return jnp.where(y > 0, y, 0.01 * y)

        h = bn_lrelu(conv(x, conv1), bn1)
        h = bn_lrelu(conv(h, conv2), bn2)
        pool = build_pool_onehot(batch, data["num_graphs"])
        cnt = jnp.sum(pool, axis=1, keepdims=True)
        return (pool @ h) / jnp.maximum(cnt, 1.0)

    xt = branch(data["x_t"], data["edge_index_t"], data["edge_type_t"], data["x_t_batch"],
                params["text_conv1"], params["text_bn1"],
                params["text_conv2"], params["text_bn2"])
    xp = branch(data["x_p"], data["edge_index_p"], data["edge_type_p"], data["x_p_batch"],
                params["prop_conv1"], params["prop_bn1"],
                params["prop_conv2"], params["prop_bn2"])
    return xt, xp


# ------------------------- main ----------------------------------------------

if __name__ == "__main__":
    key = jax.random.PRNGKey(0)
    (k_xt, k_xp, k_eit, k_ett, k_eip, k_etp,
     k_c1t, k_c2t, k_b1t, k_b2t, k_c1p, k_c2p, k_b1p, k_b2p) = jax.random.split(key, 14)

    # small, module-consistent shapes
    N_t, N_p = 16, 12                 # nodes in text / propagation graphs
    in_dim_t, in_dim_p = 16, 8        # input feature dims
    hid_dim, out_dim = 32, 16
    num_graphs = 2
    E_t, E_p = 40, 30                 # edge counts

    data = {
        "x_t": jax.random.normal(k_xt, (N_t, in_dim_t), jnp.float32),
        "x_p": jax.random.normal(k_xp, (N_p, in_dim_p), jnp.float32),
        "edge_index_t": jax.random.randint(k_eit, (2, E_t), 0, N_t),
        "edge_type_t": jax.random.randint(k_ett, (E_t,), 0, 2),
        "edge_index_p": jax.random.randint(k_eip, (2, E_p), 0, N_p),
        "edge_type_p": jax.random.randint(k_etp, (E_p,), 0, 2),
        "x_t_batch": (jnp.arange(N_t) >= N_t // 2).astype(jnp.int32),
        "x_p_batch": (jnp.arange(N_p) >= N_p // 2).astype(jnp.int32),
        "num_graphs": num_graphs,
    }

    params = {
        "text_conv1": init_rgcn_conv_params(k_c1t, in_dim_t, hid_dim),
        "text_conv2": init_rgcn_conv_params(k_c2t, hid_dim, out_dim),
        "text_bn1": init_bn_params(k_b1t, hid_dim),
        "text_bn2": init_bn_params(k_b2t, out_dim),
        "prop_conv1": init_rgcn_conv_params(k_c1p, in_dim_p, hid_dim),
        "prop_conv2": init_rgcn_conv_params(k_c2p, hid_dim, out_dim),
        "prop_bn1": init_bn_params(k_b1p, hid_dim),
        "prop_bn2": init_bn_params(k_b2p, out_dim),
    }

    x_t_out, x_p_out = rgcn_forward(params, data)
    jax.block_until_ready((x_t_out, x_p_out))

    assert x_t_out.shape == (num_graphs, out_dim)
    assert x_p_out.shape == (num_graphs, out_dim)
    assert bool(jnp.all(jnp.isfinite(x_t_out)))
    assert bool(jnp.all(jnp.isfinite(x_p_out)))

    # sanity vs an exact-f32 reference (loose tolerance: the adjacency path is bf16)
    x_t_ref, x_p_ref = rgcn_reference(params, data)
    assert bool(jnp.allclose(x_t_out, x_t_ref, rtol=1e-1, atol=1e-1))
    assert bool(jnp.allclose(x_p_out, x_p_ref, rtol=1e-1, atol=1e-1))

    print("KERNEL_OK")
</pallas_src>

<mosaic_0001>
module attributes {stable_mosaic.version = 11 : i64} {
  func.func @_rgcn_branch_kernel(%arg0: i32, %arg1: memref<2xi32, #tpu.memory_space<smem>>, %arg2: memref<1x16x16xf32, #tpu.memory_space<vmem>>, %arg3: memref<1x2x16x16xbf16, #tpu.memory_space<vmem>>, %arg4: memref<1x2x16xf32, #tpu.memory_space<vmem>>, %arg5: memref<1x3x16x32xf32, #tpu.memory_space<vmem>>, %arg6: memref<1x3x32xf32, #tpu.memory_space<vmem>>, %arg7: memref<1x3x32x16xf32, #tpu.memory_space<vmem>>, %arg8: memref<1x3x16xf32, #tpu.memory_space<vmem>>, %arg9: memref<1x2x16xf32, #tpu.memory_space<vmem>>) attributes {dimension_semantics = [#tpu.dimension_semantics<parallel>], iteration_bounds = array<i64: 2>, scalar_prefetch = 1 : i64, scratch_operands = 0 : i64, tpu.core_type = #tpu.core_type<tc>, window_params = [{transform_indices = @transform_0, window_bounds = array<i64: 1, 16, 16>}, {transform_indices = @transform_1, window_bounds = array<i64: 1, 2, 16, 16>}, {transform_indices = @transform_2, window_bounds = array<i64: 1, 2, 16>}, {transform_indices = @transform_3, window_bounds = array<i64: 1, 3, 16, 32>}, {transform_indices = @transform_4, window_bounds = array<i64: 1, 3, 32>}, {transform_indices = @transform_5, window_bounds = array<i64: 1, 3, 32, 16>}, {transform_indices = @transform_6, window_bounds = array<i64: 1, 3, 16>}, {transform_indices = @transform_7, window_bounds = array<i64: 1, 2, 16>}]} {
    %0 = arith.index_cast %arg0 : i32 to index
    %1 = memref.load %arg1[%0] : memref<2xi32, #tpu.memory_space<smem>>
    %2 = arith.sitofp %1 : i32 to f32
    %cst = arith.constant 1.000000e+00 : f32
    %3 = arith.divf %cst, %2 : f32
    %c0 = arith.constant 0 : index
    %c0_0 = arith.constant 0 : index
    %c0_1 = arith.constant 0 : index
    %4 = vector.load %arg2[%c0, %c0_0, %c0_1] : memref<1x16x16xf32, #tpu.memory_space<vmem>>, vector<1x16x16xf32>
    %5 = vector.shape_cast %4 : vector<1x16x16xf32> to vector<16x16xf32>
    %c0_2 = arith.constant 0 : index
    %c0_3 = arith.constant 0 : index
    %c0_4 = arith.constant 0 : index
    %c0_5 = arith.constant 0 : index
    %6 = vector.load %arg3[%c0_2, %c0_3, %c0_4, %c0_5] : memref<1x2x16x16xbf16, #tpu.memory_space<vmem>>, vector<1x1x16x16xbf16>
    %7 = vector.shape_cast %6 : vector<1x1x16x16xbf16> to vector<16x16xbf16>
    %c0_6 = arith.constant 0 : index
    %c1 = arith.constant 1 : index
    %c0_7 = arith.constant 0 : index
    %c0_8 = arith.constant 0 : index
    %8 = vector.load %arg3[%c0_6, %c1, %c0_7, %c0_8] : memref<1x2x16x16xbf16, #tpu.memory_space<vmem>>, vector<1x1x16x16xbf16>
    %9 = vector.shape_cast %8 : vector<1x1x16x16xbf16> to vector<16x16xbf16>
    %10 = tpu.iota {dimensions = array<i32: 0>} : vector<16x1xi32>
    %11 = vector.broadcast %1 : i32 to vector<16x1xi32>
    %12 = arith.cmpi slt, %10, %11 : vector<16x1xi32>
    %13 = arith.extui %12 : vector<16x1xi1> to vector<16x1xi32>
    %14 = arith.sitofp %13 : vector<16x1xi32> to vector<16x1xf32>
    %c0_9 = arith.constant 0 : index
    %c0_10 = arith.constant 0 : index
    %c0_11 = arith.constant 0 : index
    %15 = vector.load %arg6[%c0_9, %c0_10, %c0_11] : memref<1x3x32xf32, #tpu.memory_space<vmem>>, vector<1x1x32xf32>
    %16 = vector.shape_cast %15 : vector<1x1x32xf32> to vector<1x32xf32>
    %c0_12 = arith.constant 0 : index
    %c0_13 = arith.constant 0 : index
    %c0_14 = arith.constant 0 : index
    %c0_15 = arith.constant 0 : index
    %17 = vector.load %arg5[%c0_12, %c0_13, %c0_14, %c0_15] : memref<1x3x16x32xf32, #tpu.memory_space<vmem>>, vector<1x1x16x32xf32>
    %18 = vector.shape_cast %17 : vector<1x1x16x32xf32> to vector<16x32xf32>
    %cst_16 = arith.constant dense<0.000000e+00> : vector<16x32xf32>
    %19 = tpu.matmul %5, %18, %cst_16 {dimension_numbers = #tpu.dot_dimension_numbers<[1], [0], [0], [1], [0, 0, 1, 1], [], []>} : vector<16x16xf32>, vector<16x32xf32>, vector<16x32xf32> -> vector<16x32xf32>
    %c0_17 = arith.constant 0 : index
    %c1_18 = arith.constant 1 : index
    %c0_19 = arith.constant 0 : index
    %c0_20 = arith.constant 0 : index
    %20 = vector.load %arg5[%c0_17, %c1_18, %c0_19, %c0_20] : memref<1x3x16x32xf32, #tpu.memory_space<vmem>>, vector<1x1x16x32xf32>
    %21 = vector.shape_cast %20 : vector<1x1x16x32xf32> to vector<16x32xf32>
    %cst_21 = arith.constant dense<0.000000e+00> : vector<16x32xf32>
    %22 = tpu.matmul %5, %21, %cst_21 {dimension_numbers = #tpu.dot_dimension_numbers<[1], [0], [0], [1], [0, 0, 1, 1], [], []>} : vector<16x16xf32>, vector<16x32xf32>, vector<16x32xf32> -> vector<16x32xf32>
    %c0_22 = arith.constant 0 : index
    %c2 = arith.constant 2 : index
    %c0_23 = arith.constant 0 : index
    %c0_24 = arith.constant 0 : index
    %23 = vector.load %arg5[%c0_22, %c2, %c0_23, %c0_24] : memref<1x3x16x32xf32, #tpu.memory_space<vmem>>, vector<1x1x16x32xf32>
    %24 = vector.shape_cast %23 : vector<1x1x16x32xf32> to vector<16x32xf32>
    %cst_25 = arith.constant dense<0.000000e+00> : vector<16x32xf32>
    %25 = tpu.matmul %5, %24, %cst_25 {dimension_numbers = #tpu.dot_dimension_numbers<[1], [0], [0], [1], [0, 0, 1, 1], [], []>} : vector<16x16xf32>, vector<16x32xf32>, vector<16x32xf32> -> vector<16x32xf32>
    %26 = arith.truncf %19 : vector<16x32xf32> to vector<16x32xbf16>
    %cst_26 = arith.constant dense<0.000000e+00> : vector<16x32xf32>
    %27 = tpu.matmul %7, %26, %cst_26 {dimension_numbers = #tpu.dot_dimension_numbers<[1], [0], [0], [1], [0, 0, 1, 1], [], []>} : vector<16x16xbf16>, vector<16x32xbf16>, vector<16x32xf32> -> vector<16x32xf32>
    %28 = arith.truncf %22 : vector<16x32xf32> to vector<16x32xbf16>
    %cst_27 = arith.constant dense<0.000000e+00> : vector<16x32xf32>
    %29 = tpu.matmul %9, %28, %cst_27 {dimension_numbers = #tpu.dot_dimension_numbers<[1], [0], [0], [1], [0, 0, 1, 1], [], []>} : vector<16x16xbf16>, vector<16x32xbf16>, vector<16x32xf32> -> vector<16x32xf32>
    %30 = arith.addf %27, %29 : vector<16x32xf32>
    %31 = arith.addf %30, %25 : vector<16x32xf32>
    %32 = vector.broadcast %16 : vector<1x32xf32> to vector<16x32xf32>
    %33 = arith.addf %31, %32 : vector<16x32xf32>
    %c0_28 = arith.constant 0 : index
    %c1_29 = arith.constant 1 : index
    %c0_30 = arith.constant 0 : index
    %34 = vector.load %arg6[%c0_28, %c1_29, %c0_30] : memref<1x3x32xf32, #tpu.memory_space<vmem>>, vector<1x1x32xf32>
    %35 = vector.shape_cast %34 : vector<1x1x32xf32> to vector<1x32xf32>
    %c0_31 = arith.constant 0 : index
    %c2_32 = arith.constant 2 : index
    %c0_33 = arith.constant 0 : index
    %36 = vector.load %arg6[%c0_31, %c2_32, %c0_33] : memref<1x3x32xf32, #tpu.memory_space<vmem>>, vector<1x1x32xf32>
    %37 = vector.shape_cast %36 : vector<1x1x32xf32> to vector<1x32xf32>
    %38 = vector.broadcast %14 : vector<16x1xf32> to vector<16x32xf32>
    %39 = arith.mulf %33, %38 : vector<16x32xf32>
    %cst_34 = arith.constant dense<0.000000e+00> : vector<32xf32>
    %40 = vector.multi_reduction <add>, %39, %cst_34 [0] : vector<16x32xf32> to vector<32xf32>
    %41 = vector.shape_cast %40 : vector<32xf32> to vector<1x32xf32>
    %42 = vector.broadcast %3 : f32 to vector<1x32xf32>
    %43 = arith.mulf %41, %42 : vector<1x32xf32>
    %44 = vector.broadcast %43 : vector<1x32xf32> to vector<16x32xf32>
    %45 = arith.subf %33, %44 : vector<16x32xf32>
    %46 = arith.mulf %45, %45 : vector<16x32xf32>
    %47 = vector.broadcast %14 : vector<16x1xf32> to vector<16x32xf32>
    %48 = arith.mulf %46, %47 : vector<16x32xf32>
    %cst_35 = arith.constant dense<0.000000e+00> : vector<32xf32>
    %49 = vector.multi_reduction <add>, %48, %cst_35 [0] : vector<16x32xf32> to vector<32xf32>
    %50 = vector.shape_cast %49 : vector<32xf32> to vector<1x32xf32>
    %51 = vector.broadcast %3 : f32 to vector<1x32xf32>
    %52 = arith.mulf %50, %51 : vector<1x32xf32>
    %cst_36 = arith.constant 9.99999974E-6 : f32
    %53 = vector.broadcast %cst_36 : f32 to vector<1x32xf32>
    %54 = arith.addf %52, %53 : vector<1x32xf32>
    %55 = math.rsqrt %54 : vector<1x32xf32>
    %56 = vector.broadcast %55 : vector<1x32xf32> to vector<16x32xf32>
    %57 = arith.mulf %45, %56 : vector<16x32xf32>
    %58 = vector.broadcast %35 : vector<1x32xf32> to vector<16x32xf32>
    %59 = arith.mulf %57, %58 : vector<16x32xf32>
    %60 = vector.broadcast %37 : vector<1x32xf32> to vector<16x32xf32>
    %61 = arith.addf %59, %60 : vector<16x32xf32>
    %cst_37 = arith.constant 0.000000e+00 : f32
    %62 = vector.broadcast %cst_37 : f32 to vector<16x32xf32>
    %63 = arith.cmpf ogt, %61, %62 : vector<16x32xf32>
    %cst_38 = arith.constant 0.00999999977 : f32
    %64 = vector.broadcast %cst_38 : f32 to vector<16x32xf32>
    %65 = arith.mulf %64, %61 : vector<16x32xf32>
    %66 = arith.select %63, %61, %65 : vector<16x32xi1>, vector<16x32xf32>
    %c0_39 = arith.constant 0 : index
    %c0_40 = arith.constant 0 : index
    %c0_41 = arith.constant 0 : index
    %67 = vector.load %arg8[%c0_39, %c0_40, %c0_41] : memref<1x3x16xf32, #tpu.memory_space<vmem>>, vector<1x1x16xf32>
    %68 = vector.shape_cast %67 : vector<1x1x16xf32> to vector<1x16xf32>
    %c0_42 = arith.constant 0 : index
    %c0_43 = arith.constant 0 : index
    %c0_44 = arith.constant 0 : index
    %c0_45 = arith.constant 0 : index
    %69 = vector.load %arg7[%c0_42, %c0_43, %c0_44, %c0_45] : memref<1x3x32x16xf32, #tpu.memory_space<vmem>>, vector<1x1x32x16xf32>
    %70 = vector.shape_cast %69 : vector<1x1x32x16xf32> to vector<32x16xf32>
    %cst_46 = arith.constant dense<0.000000e+00> : vector<16x16xf32>
    %71 = tpu.matmul %66, %70, %cst_46 {dimension_numbers = #tpu.dot_dimension_numbers<[1], [0], [0], [1], [0, 0, 1, 1], [], []>} : vector<16x32xf32>, vector<32x16xf32>, vector<16x16xf32> -> vector<16x16xf32>
    %c0_47 = arith.constant 0 : index
    %c1_48 = arith.constant 1 : index
    %c0_49 = arith.constant 0 : index
    %c0_50 = arith.constant 0 : index
    %72 = vector.load %arg7[%c0_47, %c1_48, %c0_49, %c0_50] : memref<1x3x32x16xf32, #tpu.memory_space<vmem>>, vector<1x1x32x16xf32>
    %73 = vector.shape_cast %72 : vector<1x1x32x16xf32> to vector<32x16xf32>
    %cst_51 = arith.constant dense<0.000000e+00> : vector<16x16xf32>
    %74 = tpu.matmul %66, %73, %cst_51 {dimension_numbers = #tpu.dot_dimension_numbers<[1], [0], [0], [1], [0, 0, 1, 1], [], []>} : vector<16x32xf32>, vector<32x16xf32>, vector<16x16xf32> -> vector<16x16xf32>
    %c0_52 = arith.constant 0 : index
    %c2_53 = arith.constant 2 : index
    %c0_54 = arith.constant 0 : index
    %c0_55 = arith.constant 0 : index
    %75 = vector.load %arg7[%c0_52, %c2_53, %c0_54, %c0_55] : memref<1x3x32x16xf32, #tpu.memory_space<vmem>>, vector<1x1x32x16xf32>
    %76 = vector.shape_cast %75 : vector<1x1x32x16xf32> to vector<32x16xf32>
    %cst_56 = arith.constant dense<0.000000e+00> : vector<16x16xf32>
    %77 = tpu.matmul %66, %76, %cst_56 {dimension_numbers = #tpu.dot_dimension_numbers<[1], [0], [0], [1], [0, 0, 1, 1], [], []>} : vector<16x32xf32>, vector<32x16xf32>, vector<16x16xf32> -> vector<16x16xf32>
    %78 = arith.truncf %71 : vector<16x16xf32> to vector<16x16xbf16>
    %cst_57 = arith.constant dense<0.000000e+00> : vector<16x16xf32>
    %79 = tpu.matmul %7, %78, %cst_57 {dimension_numbers = #tpu.dot_dimension_numbers<[1], [0], [0], [1], [0, 0, 1, 1], [], []>} : vector<16x16xbf16>, vector<16x16xbf16>, vector<16x16xf32> -> vector<16x16xf32>
    %80 = arith.truncf %74 : vector<16x16xf32> to vector<16x16xbf16>
    %cst_58 = arith.constant dense<0.000000e+00> : vector<16x16xf32>
    %81 = tpu.matmul %9, %80, %cst_58 {dimension_numbers = #tpu.dot_dimension_numbers<[1], [0], [0], [1], [0, 0, 1, 1], [], []>} : vector<16x16xbf16>, vector<16x16xbf16>, vector<16x16xf32> -> vector<16x16xf32>
    %82 = arith.addf %79, %81 : vector<16x16xf32>
    %83 = arith.addf %82, %77 : vector<16x16xf32>
    %84 = vector.broadcast %68 : vector<1x16xf32> to vector<16x16xf32>
    %85 = arith.addf %83, %84 : vector<16x16xf32>
    %c0_59 = arith.constant 0 : index
    %c1_60 = arith.constant 1 : index
    %c0_61 = arith.constant 0 : index
    %86 = vector.load %arg8[%c0_59, %c1_60, %c0_61] : memref<1x3x16xf32, #tpu.memory_space<vmem>>, vector<1x1x16xf32>
    %87 = vector.shape_cast %86 : vector<1x1x16xf32> to vector<1x16xf32>
    %c0_62 = arith.constant 0 : index
    %c2_63 = arith.constant 2 : index
    %c0_64 = arith.constant 0 : index
    %88 = vector.load %arg8[%c0_62, %c2_63, %c0_64] : memref<1x3x16xf32, #tpu.memory_space<vmem>>, vector<1x1x16xf32>
    %89 = vector.shape_cast %88 : vector<1x1x16xf32> to vector<1x16xf32>
    %90 = vector.broadcast %14 : vector<16x1xf32> to vector<16x16xf32>
    %91 = arith.mulf %85, %90 : vector<16x16xf32>
    %cst_65 = arith.constant dense<0.000000e+00> : vector<16xf32>
    %92 = vector.multi_reduction <add>, %91, %cst_65 [0] : vector<16x16xf32> to vector<16xf32>
    %93 = vector.shape_cast %92 : vector<16xf32> to vector<1x16xf32>
    %94 = vector.broadcast %3 : f32 to vector<1x16xf32>
    %95 = arith.mulf %93, %94 : vector<1x16xf32>
    %96 = vector.broadcast %95 : vector<1x16xf32> to vector<16x16xf32>
    %97 = arith.subf %85, %96 : vector<16x16xf32>
    %98 = arith.mulf %97, %97 : vector<16x16xf32>
    %99 = vector.broadcast %14 : vector<16x1xf32> to vector<16x16xf32>
    %100 = arith.mulf %98, %99 : vector<16x16xf32>
    %cst_66 = arith.constant dense<0.000000e+00> : vector<16xf32>
    %101 = vector.multi_reduction <add>, %100, %cst_66 [0] : vector<16x16xf32> to vector<16xf32>
    %102 = vector.shape_cast %101 : vector<16xf32> to vector<1x16xf32>
    %103 = vector.broadcast %3 : f32 to vector<1x16xf32>
    %104 = arith.mulf %102, %103 : vector<1x16xf32>
    %cst_67 = arith.constant 9.99999974E-6 : f32
    %105 = vector.broadcast %cst_67 : f32 to vector<1x16xf32>
    %106 = arith.addf %104, %105 : vector<1x16xf32>
    %107 = math.rsqrt %106 : vector<1x16xf32>
    %108 = vector.broadcast %107 : vector<1x16xf32> to vector<16x16xf32>
    %109 = arith.mulf %97, %108 : vector<16x16xf32>
    %110 = vector.broadcast %87 : vector<1x16xf32> to vector<16x16xf32>
    %111 = arith.mulf %109, %110 : vector<16x16xf32>
    %112 = vector.broadcast %89 : vector<1x16xf32> to vector<16x16xf32>
    %113 = arith.addf %111, %112 : vector<16x16xf32>
    %cst_68 = arith.constant 0.000000e+00 : f32
    %114 = vector.broadcast %cst_68 : f32 to vector<16x16xf32>
    %115 = arith.cmpf ogt, %113, %114 : vector<16x16xf32>
    %cst_69 = arith.constant 0.00999999977 : f32
    %116 = vector.broadcast %cst_69 : f32 to vector<16x16xf32>
    %117 = arith.mulf %116, %113 : vector<16x16xf32>
    %118 = arith.select %115, %113, %117 : vector<16x16xi1>, vector<16x16xf32>
    %c0_70 = arith.constant 0 : index
    %c0_71 = arith.constant 0 : index
    %c0_72 = arith.constant 0 : index
    %119 = vector.load %arg4[%c0_70, %c0_71, %c0_72] : memref<1x2x16xf32, #tpu.memory_space<vmem>>, vector<1x2x16xf32>
    %120 = vector.shape_cast %119 : vector<1x2x16xf32> to vector<2x16xf32>
    %cst_73 = arith.constant dense<0.000000e+00> : vector<2xf32>
    %121 = vector.multi_reduction <add>, %120, %cst_73 [1] : vector<2x16xf32> to vector<2xf32>
    %122 = vector.shape_cast %121 : vector<2xf32> to vector<2x1xf32>
    %cst_74 = arith.constant dense<0.000000e+00> : vector<2x16xf32>
    %123 = tpu.matmul %120, %118, %cst_74 {dimension_numbers = #tpu.dot_dimension_numbers<[1], [0], [0], [1], [0, 0, 1, 1], [], []>} : vector<2x16xf32>, vector<16x16xf32>, vector<2x16xf32> -> vector<2x16xf32>
    %cst_75 = arith.constant 1.000000e+00 : f32
    %124 = vector.broadcast %cst_75 : f32 to vector<2x1xf32>
    %125 = arith.maximumf %122, %124 : vector<2x1xf32>
    %126 = vector.broadcast %125 : vector<2x1xf32> to vector<2x16xf32>
    %127 = arith.divf %123, %126 : vector<2x16xf32>
    %c0_76 = arith.constant 0 : index
    %c0_77 = arith.constant 0 : index
    %c0_78 = arith.constant 0 : index
    %128 = vector.load %arg9[%c0_76, %c0_77, %c0_78] : memref<1x2x16xf32, #tpu.memory_space<vmem>>, vector<1x2x16xf32>
    %129 = vector.shape_cast %128 : vector<1x2x16xf32> to vector<2x16xf32>
    %130 = vector.shape_cast %127 : vector<2x16xf32> to vector<1x2x16xf32>
    tpu.vector_store %arg9[%c0_76, %c0_77, %c0_78], %130 {strides = array<i32>} : memref<1x2x16xf32, #tpu.memory_space<vmem>>, vector<1x2x16xf32>,
    return
  }
  func.func @transform_0(%arg0: i32, %arg1: memref<2xi32, #tpu.memory_space<smem>>) -> (i32, i32, i32) {
    %c0_i32 = arith.constant 0 : i32
    %c0_i32_0 = arith.constant 0 : i32
    %c0_i32_1 = arith.constant 0 : i32
    return %arg0, %c0_i32, %c0_i32_0 : i32, i32, i32
  }
  func.func @transform_1(%arg0: i32, %arg1: memref<2xi32, #tpu.memory_space<smem>>) -> (i32, i32, i32, i32) {
    %c0_i32 = arith.constant 0 : i32
    %c0_i32_0 = arith.constant 0 : i32
    %c0_i32_1 = arith.constant 0 : i32
    %c0_i32_2 = arith.constant 0 : i32
    return %arg0, %c0_i32, %c0_i32_0, %c0_i32_1 : i32, i32, i32, i32
  }
  func.func @transform_2(%arg0: i32, %arg1: memref<2xi32, #tpu.memory_space<smem>>) -> (i32, i32, i32) {
    %c0_i32 = arith.constant 0 : i32
    %c0_i32_0 = arith.constant 0 : i32
    %c0_i32_1 = arith.constant 0 : i32
    return %arg0, %c0_i32, %c0_i32_0 : i32, i32, i32
  }
  func.func @transform_3(%arg0: i32, %arg1: memref<2xi32, #tpu.memory_space<smem>>) -> (i32, i32, i32, i32) {
    %c0_i32 = arith.constant 0 : i32
    %c0_i32_0 = arith.constant 0 : i32
    %c0_i32_1 = arith.constant 0 : i32
    %c0_i32_2 = arith.constant 0 : i32
    return %arg0, %c0_i32, %c0_i32_0, %c0_i32_1 : i32, i32, i32, i32
  }
  func.func @transform_4(%arg0: i32, %arg1: memref<2xi32, #tpu.memory_space<smem>>) -> (i32, i32, i32) {
    %c0_i32 = arith.constant 0 : i32
    %c0_i32_0 = arith.constant 0 : i32
    %c0_i32_1 = arith.constant 0 : i32
    return %arg0, %c0_i32, %c0_i32_0 : i32, i32, i32
  }
  func.func @transform_5(%arg0: i32, %arg1: memref<2xi32, #tpu.memory_space<smem>>) -> (i32, i32, i32, i32) {
    %c0_i32 = arith.constant 0 : i32
    %c0_i32_0 = arith.constant 0 : i32
    %c0_i32_1 = arith.constant 0 : i32
    %c0_i32_2 = arith.constant 0 : i32
    return %arg0, %c0_i32, %c0_i32_0, %c0_i32_1 : i32, i32, i32, i32
  }
  func.func @transform_6(%arg0: i32, %arg1: memref<2xi32, #tpu.memory_space<smem>>) -> (i32, i32, i32) {
    %c0_i32 = arith.constant 0 : i32
    %c0_i32_0 = arith.constant 0 : i32
    %c0_i32_1 = arith.constant 0 : i32
    return %arg0, %c0_i32, %c0_i32_0 : i32, i32, i32
  }
  func.func @transform_7(%arg0: i32, %arg1: memref<2xi32, #tpu.memory_space<smem>>) -> (i32, i32, i32) {
    %c0_i32 = arith.constant 0 : i32
    %c0_i32_0 = arith.constant 0 : i32
    %c0_i32_1 = arith.constant 0 : i32
    return %arg0, %c0_i32, %c0_i32_0 : i32, i32, i32
  }
}

</mosaic_0001>

<bundles_post_ra>
// kernel: tpu_custom_call.1
= control target key start
LH: loop header
LB: loop body
LE: loop exit
PB: predicated region body
PF: predicated region fallthrough
CT: control target
= control target key end

     0   :  { %s2043_s0 = inlined_call_operand.vmem [shape: s32[2], index: 0, kind: input, shape index: {}]   ;;  %s2044_s1 = inlined_call_operand.vmem [shape: f32[2,16,16], index: 1, kind: input, shape index: {}]   ;;  %s2045_s2 = inlined_call_operand.vmem [shape: bf16[2,2,16,16], index: 2, kind: input, shape index: {}]   ;;  %s2046_s3 = inlined_call_operand.vmem [shape: f32[2,2,16], index: 3, kind: input, shape index: {}]   ;;  %s2047_s4 = inlined_call_operand.vmem [shape: f32[2,3,16,32], index: 4, kind: input, shape index: {}]   ;;  %s2048_s5 = inlined_call_operand.vmem [shape: f32[2,3,32], index: 5, kind: input, shape index: {}]   ;;  %s2049_s6 = inlined_call_operand.vmem [shape: f32[2,3,32,16], index: 6, kind: input, shape index: {}]   ;;  %s2050_s7 = inlined_call_operand.vmem [shape: f32[2,3,16], index: 7, kind: input, shape index: {}]   ;;  %s2051_s8 = inlined_call_operand.hbm [shape: f32[2,2,16], index: 8, kind: output, shape index: {}]  }
   0x1   :  { %s13_s29 = sshll.u32 %s2043_s0, 4  ;;  %s14_s29 = int_to_ptr.vmem [resolvable:$true] %s13_s29 }
   0x2   :  { %s1681_s30 = scalar_lea.vmem %s14_s29, 16  ;;  %p1686_p1 = scmp.lt.s32.totalorder %s14_s29, %s14_s29 }
   0x3   :  { %p1682_p0 = scmp.ne.s32.totalorder %s14_s29, %s1681_s30  ;;  %p1687_p2 = scmp.lt.s32.totalorder %s1681_s30, %s1681_s30 }
   0x5   :  { %p1688_p3 = por %p1687_p2, %p1686_p1 }
   0x7   :  { %p1689_p4 = pnand %p1688_p3, %p1682_p0 }
   0x9   :  { %1692 = shalt.err (!%p1689_p4)  }
   0xa   :  { %s1757_s9 = smov [#allocation3]  }
   0xb   :  { %16 = dma.vmem_to_smem %s14_s29, 16, %s1757_s9, [#allocation2] }
   0xc   :  { %1735 = dma.done.wait [#allocation2], 16 }
   0xd   :  { %1736 = vsyncadd [#allocation2], 4294967280 }
   0xe   :  { %18 = sfence }
   0xf   :  { %19 = vsyncpa [#allocation5], 0 }
  0x10   :  { %21 = vsyncpa [#allocation5 + $0x1], 0  ;;  %s1809_s10 = smov 0   ;;  %s1811_s11 = smov 0  }
  0x11   :  { %s1813_s0 = smov 0   ;;  %s1815_s12 = smov 0  }
  0x12 LB: > { %s1830_s13 = sadd.s32 4294967295, %s1755_s12   ;;  %s1438_s14 = sadd.s32 4294967294, %s1755_s12   ;;  %s1755_s12 = sphi %s1815_s12, %s2057_s12   ;;  %s1751_s0 = sphi %s1813_s0, %s2056_s0   ;;  %s1747_s11 = sphi %s1811_s11, %s2055_s11   ;;  %s1743_s10 = sphi %s1809_s10, %s2054_s10  }
  0x13   : > { %s1834_s15 = sadd.s32 1, %s1755_s12   ;;  %s216_s16 = sadd.s32 1, %s1751_s0 }
  0x14   : > { %s213_s17 = ssub.s32 %s1755_s12, %s1834_s15  ;;  %p226_p5 = scmp.ne.s32.totalorder %s1751_s0, %s1747_s11 }
  0x15   : > { %p214_p6 = scmp.eq.s32.totalorder %s213_s17, 0  ;;  %p227_p7 = scmp.eq.s32.totalorder %s1830_s13, 1 }
  0x16   : > { %p232_p8 = scmp.ne.s32.totalorder %s1747_s11, %s1743_s10  ;;  %p233_p9 = scmp.eq.s32.totalorder %s1438_s14, 1 }
  0x17   : > { %s1845_s18 = scalar_select %p214_p6, %s1751_s0, %s216_s16  }
  0x18   : > { %p1847_p10 = por %p227_p7, %p226_p5  ;;  %p1851_p11 = por %p233_p9, %p232_p8 }
  0x19   : > { %p1441_p12 = scmp.ge.s32.totalorder %s1755_s12, 1  ;;  %p304_p13 = scmp.lt.s32.totalorder %s1755_s12, 3 }
  0x1b   : > { %p305_p0 = pnand %p1441_p12, %p304_p13 }
  0x1c   : > { %p363_p1 = scmp.lt.s32.totalorder (!%p305_p0), %s1830_s13, 1  ;;  %s1887_s16 = sld [smem:[#allocation3 + %s1830_s13]] (!%p305_p0) }
  0x1d   : > { %308 = sbr.rel (%p305_p0) target bundleno = 1196 (0x4ac), region = 48 }
  0x22   : > { %s1859_s21 = scalar_select %p363_p1, %s1830_s13, 1  ;;  %vm421_vm0 = vcmask 130048   ;;  %v1758_v8 = vmov 0.0   ;;  %vm1759_vm1 = vmmov 0   ;;  %v408_v29 = vlaneseq }
  0x23   : > { %s397_s17 = scvt.s32.f32 %s1887_s16  ;;  %v411_v33 = vstv %s1887_s16  ;;  %vm771_vm4 = vcmask 261120   ;;  %vm1212_vm7 = vcmask 123904  }
  0x24   : > { %s1625_s22 = smul.u32 48, %s1859_s21  ;;  %s1497_s23 = sshll.u32 %s1859_s21, 4  ;;  %v409_v31 = vshrl.u32 %v408_v29, 7 }
  0x25   : > { %s367_s26 = scalar_lea.vmem %s2044_s1, %s1497_s23  ;;  %s1872_s14 = scalar_lea.vmem %s2045_s2, %s1497_s23  ;;  %v398_v9 = vstv %s397_s17 }
  0x26   : > { %s381_s29 = scalar_lea.vmem %s2047_s4, %s1625_s22  ;;  %v401_v0 = vld [vmem:[%s367_s26] sm:$0xff]  ;;  %v402_v5 = vld [vmem:[%s367_s26 + $0x8] sm:$0xff]  ;;  %1673 = vrcp.f32 %v398_v9  ;;  %s1626_s22 = smul.u32 96, %s1859_s21  ;;  %v410_v36 = vadd.s32 8, %v409_v31  ;;  %vm412_vm2 = vcmp.lt.s32.totalorder %v409_v31, %v411_v33 }
  0x27   : > { %v420_v1 = vld [vmem:[%s381_s29 + $0x8] sm:$0xff]  ;;  %v1459_v2 = vld [vmem:[%s381_s29 + $0x18] sm:$0xff]  ;;  %v419_v3 = vld [vmem:[%s381_s29] sm:$0xff]  ;;  %1544 = vmatprep.mubr.msk.f32.mxu0 %vm421_vm0, %v401_v0  ;;  %1551 = vmatprep.mubr.msk.f32.mxu1 %vm421_vm0, %v401_v0  ;;  %s1449_s26 = sshll.u32 %s1859_s21, 2  ;;  %v1930_v45 = vsel %vm412_vm2, 1.0, %v1758_v8  ;;  %s1447_s9 = sshll.u32 %s1859_s21, 1 }
  0x28   : > { %1540 = vmatprep.subr.mxu0 %v420_v1  ;;  %1547 = vmatprep.subr.mxu1 %v1459_v2  ;;  %v1458_v4 = vld [vmem:[%s381_s29 + $0x10] sm:$0xff]  ;;  %v1463_v6 = vld [vmem:[%s381_s29 + $0x28] sm:$0xff]  ;;  %v1462_v7 = vld [vmem:[%s381_s29 + $0x20] sm:$0xff]  ;;  %s1904_s25 = scalar_lea.vmem %s2049_s6, %s1626_s22  ;;  %s1925_s29 = scalar_lea.vmem %s2048_s5, %s1449_s26  ;;  %vm413_vm3 = vcmp.lt.s32.totalorder %v410_v36, %v411_v33 }
  0x29   : > { %1541 = vmatpush3.msra.mxu0 %v420_v1  ;;  %1548 = vmatpush3.msra.mxu1 %v1459_v2  ;;  %v1891_v17 = vld [vmem:[%s1872_s14 + $0x8] sm:$0xff]   ;;  %v1894_v18 = vld [vmem:[%s1872_s14] sm:$0xff]   ;;  %v825_v19 = vld [vmem:[%s1904_s25 + $0x18] sm:$0xff]  ;;  %v1933_v49 = vsel %vm413_vm3, 1.0, %v1758_v8  ;;  %s376_s17 = scalar_lea.vmem %s2046_s3, %s1447_s9  ;;  %s1984_s24 = scalar_lea.vmem %s2050_s7, %s1449_s26 }
  0x2a   : > { %1542 = vmatprep.subr.mxu0 %v419_v3  ;;  %1549 = vmatprep.subr.mxu1 %v1458_v4  ;;  %v1478_v20 = vld [vmem:[%s1904_s25 + $0x38] sm:$0xff]  ;;  %v824_v21 = vld [vmem:[%s1904_s25 + $0x10] sm:$0xff]  ;;  %v823_v23 = vld [vmem:[%s1904_s25 + $0x8] sm:$0xff]  ;;  %s360_s21 = sand.u32 1, %s1747_s11   ;;  %s1494_s26 = sshll.u32 %s1830_s13, 5 }
  0x2b   : > { %1543 = vmatpush3.msra.mxu0 %v419_v3  ;;  %1550 = vmatpush3.msra.mxu1 %v1458_v4  ;;  %v1477_v22 = vld [vmem:[%s1904_s25 + $0x30] sm:$0xff]  ;;  %v1476_v24 = vld [vmem:[%s1904_s25 + $0x28] sm:$0xff]  ;;  %v822_v25 = vld [vmem:[%s1904_s25] sm:$0xff]  ;;  %s2007_s9 = scalar_lea.hbm %s2051_s8, %s1494_s26  ;;  %s1294_s14 = scalar_lea.sflag [#allocation5], %s360_s21 }
  0x2c   : > { %1545 = vmatmul.mubr.msk.f32.vlgmr.msra.gmra.mxu0 %vm421_vm0, %v402_v5  ;;  %1552 = vmatmul.mubr.msk.f32.vlgmr.msra.gmra.mxu1 %vm421_vm0, %v402_v5  ;;  %v1475_v26 = vld [vmem:[%s1904_s25 + $0x20] sm:$0xff]  ;;  %v1915_v27 = vld [vmem:[%s1904_s25 + $0x58] sm:$0xff]  ;;  %s1760_s13 = smov [#allocation4]  }
  0x2d   : > { %1554 = vmatprep.subr.mxu0 %v1463_v6  ;;  %1558 = vmatprep.mubr.msk.f32.mxu0 %vm421_vm0, %v401_v0  ;;  %v1470_v37 = vld [vmem:[%s1925_s29] ss:$0 sm:$0xff] }
  0x2e   : > { %1555 = vmatpush3.msra.mxu0 %v1463_v6  ;;  %1561 = vmatprep.subr.bf16.mxu1 %v1758_v8  ;;  %v1481_v36 = vld [vmem:[%s1904_s25 + $0x40] sm:$0xff] }
  0x2f   : > { %1556 = vmatprep.subr.mxu0 %v1462_v7  ;;  %1563 = vmatprep.mubr.msk.bf16.mxu1 %vm1759_vm1, %v1758_v8 }
  0x30   : > { %1557 = vmatpush3.msra.mxu0 %v1462_v7 }
  0x31   : > { %1559 = vmatmul.mubr.msk.f32.vlgmr.msra.gmra.mxu0 %vm421_vm0, %v402_v5  ;;  %1567 = vmatprep.subr.bf16.mxu0 %v1758_v8 }
  0x32   : > { %1569 = vmatprep.mubr.msk.bf16.mxu0 %vm1759_vm1, %v1758_v8 }
  0x33   : > { %v1674_v10 = vpop.eup %1673 }
  0x34   : > { %1627 = vpush %v1674_v10 }
  0x65   : > { %s1628_s30 = spop %1627 }
  0x66   : > { %v1939_v61 = vstv %s1628_s30 }
  0xec   : > { %v1546_v11 = vpop.f32.mrf.mxu0  ;;  %v1553_v12 = vpop.f32.mrf.mxu1 }
  0xee   : > { %v494_v13 = vpop.f32.mrf.mxu0  ;;  %v572_v14 = vpop.f32.mrf.mxu1 }
  0xef   : > { %v659_v15 = vpack.c.bf16 %v1546_v11, %v494_v13  ;;  %v660_v16 = vpack.c.bf16 %v1553_v12, %v572_v14 }
  0xf1   : > { %1562 = vmatpush3.bf16.msra.mxu1 %v660_v16  ;;  %1568 = vmatpush3.bf16.msra.mxu0 %v659_v15  ;;  %v1560_v28 = vpop.f32.mrf.mxu0 }
  0xf2   : > { %1573 = vmatprep.subr.mxu1 %v825_v19  ;;  %1584 = vmatprep.subr.mxu0 %v1478_v20 }
  0xf3   : > { %v650_v30 = vpop.f32.mrf.mxu0 }
  0xf4   : > { %1564 = vmatmul.mubr.msk.bf16.vlgmr.msra.gmra.mxu1 %vm421_vm0, %v1891_v17  ;;  %1570 = vmatmul.mubr.msk.bf16.vlgmr.msra.gmra.mxu0 %vm421_vm0, %v1894_v18 }
  0xf5   : > { %1574 = vmatpush3.msra.mxu1 %v825_v19  ;;  %1585 = vmatpush3.msra.mxu0 %v1478_v20 }
  0xf6   : > { %1575 = vmatprep.subr.mxu1 %v824_v21  ;;  %1586 = vmatprep.subr.mxu0 %v1477_v22 }
  0xf7   : > { %1576 = vmatpush3.msra.mxu1 %v824_v21  ;;  %1587 = vmatpush3.msra.mxu0 %v1477_v22  ;;  %v1471_v21 = vld [vmem:[%s1925_s29 + $0x1] ss:$0 sm:$0xff] }
  0xf8   : > { %1577 = vmatprep.subr.mxu1 %v823_v23  ;;  %1588 = vmatprep.subr.mxu0 %v1476_v24 }
  0xf9   : > { %1578 = vmatpush3.msra.mxu1 %v823_v23  ;;  %1589 = vmatpush3.msra.mxu0 %v1476_v24  ;;  %v1472_v24 = vld [vmem:[%s1925_s29 + $0x2] ss:$0 sm:$0xff] }
  0xfa   : > { %1579 = vmatprep.subr.mxu1 %v822_v25  ;;  %1590 = vmatprep.subr.mxu0 %v1475_v26 }
  0xfb   : > { %1580 = vmatpush3.msra.mxu1 %v822_v25  ;;  %1591 = vmatpush3.msra.mxu0 %v1475_v26 }
  0xfc   : > { %1595 = vmatprep.subr.mxu1 %v1915_v27  ;;  %1606 = vmatprep.subr.bf16.mxu0 %v1758_v8 }
 0x1b4   : > { %v703_v32 = vpop.f32.mrf.mxu1  ;;  %v752_v34 = vpop.f32.mrf.mxu0 }
 0x1b5   : > { %v753_v35 = vadd.f32 %v752_v34, %v703_v32  ;;  %v1483_v34 = vld [vmem:[%s1904_s25 + $0x50] sm:$0xff] }
 0x1b6   : > { %v1565_v38 = vpop.f32.mrf.mxu1  ;;  %v1571_v39 = vpop.f32.mrf.mxu0 }
 0x1b7   : > { %v759_v40 = vadd.f32 %v753_v35, %v650_v30  ;;  %v1482_v35 = vld [vmem:[%s1904_s25 + $0x48] sm:$0xff]  ;;  %s1442_s25 = sshll.u32 %s360_s21, 1 }
 0x1b8   : > { %v706_v41 = vpop.f32.mrf.mxu1  ;;  %v755_v42 = vpop.f32.mrf.mxu0  ;;  %s362_s27 = scalar_lea.vmem [#allocation4], %s1442_s25 }
 0x1b9   : > { %v765_v43 = vadd.f32 %v1470_v37, %v759_v40  ;;  %v756_v44 = vadd.f32 %v755_v42, %v706_v41  ;;  %v1975_v42 = vld [vmem:[%s376_s17] sm:$0x3]  ;;  %s1307_s28 = sshll.u32 %s362_s27, 4  ;;  %s1697_s17 = sshll.u32 %s1760_s13, 4  ;;  %s1308_s28 = int_to_ptr.vmem [resolvable:$true] %s1307_s28  ;;  %s1698_s17 = int_to_ptr.vmem [resolvable:$false] %s1697_s17 }
 0x1ba   : > { %v1566_v46 = vpop.f32.mrf.mxu1  ;;  %v1572_v47 = vpop.f32.mrf.mxu0  ;;  %s1693_s16 = scalar_lea.vmem %s1308_s28, 32  ;;  %s1699_s22 = scalar_lea.vmem %s1698_s17, 64 }
 0x1bb   : > { %v760_v48 = vadd.f32 %v1560_v28, %v756_v44  ;;  %v769_v50 = vmul.f32 %v1930_v45, %v765_v43  ;;  %p1694_p2 = scmp.ne.s32.totalorder %s1308_s28, %s1693_s16  ;;  %p1700_p5 = scmp.lt.s32.totalorder %s1308_s28, %s1698_s17 }
 0x1bc   : > { %p1701_p6 = scmp.lt.s32.totalorder %s1699_s22, %s1693_s16 }
 0x1bd   : > { %v766_v51 = vadd.f32 %v1470_v37, %v760_v48  ;;  %v772_v53 = vsel %vm771_vm4, %v769_v50, 0.0  ;;  %v1489_v48 = vld [vmem:[%s1984_s24] ss:$0 sm:$0xff]  ;;  %p1695_p3 = pnand %p1694_p2, %p1847_p10 }
 0x1be   : > { %p1702_p7 = por %p1701_p6, %p1700_p5 }
 0x1bf   : > { %v770_v52 = vmul.f32 %v1933_v49, %v766_v51  ;;  %p1696_p4 = pneg %p1695_p3 }
 0x1c1   : > { %v773_v54 = vsel %vm771_vm4, %v770_v52, 0.0  ;;  %p1703_p8 = pnand %p1702_p7, %p1696_p4 }
 0x1c2   : > { %v774_v55 = vadd.f32 %v773_v54, %v772_v53 }
 0x1c4   : > { %v775_v56 = vrot.slane %v774_v55, 4 }
 0x1c6   : > { %v776_v57 = vadd.f32 %v775_v56, %v774_v55 }
 0x1c8   : > { %v777_v58 = vrot.slane %v776_v57, 2 }
 0x1ca   : > { %v778_v59 = vadd.f32 %v777_v58, %v776_v57 }
 0x1cc   : > { %v779_v60 = vrot.slane %v778_v59, 1 }
 0x1ce   : > { %v780_v62 = vadd.f32 %v779_v60, %v778_v59 }
 0x1d0   : > { %v782_v63 = vmul.f32 %v1939_v61, %v780_v62 }
 0x1d2   : > { %v783_v0 = vsub.f32 %v765_v43, %v782_v63  ;;  %v784_v1 = vsub.f32 %v766_v51, %v782_v63  ;;  %v1213_v43 = vsel %vm1212_vm7, %v1975_v42, 0.0 }
 0x1d3   : > { %1214 = vadd.xlane.f32.xlu0 %v1213_v43 }
 0x1d4   : > { %v785_v2 = vmul.f32 %v783_v0, %v783_v0  ;;  %v786_v3 = vmul.f32 %v784_v1, %v784_v1 }
 0x1d6   : > { %v787_v4 = vmul.f32 %v1930_v45, %v785_v2  ;;  %v788_v5 = vmul.f32 %v1933_v49, %v786_v3 }
 0x1d8   : > { %v789_v6 = vsel %vm771_vm4, %v787_v4, 0.0  ;;  %v790_v7 = vsel %vm771_vm4, %v788_v5, 0.0 }
 0x1d9   : > { %v791_v9 = vadd.f32 %v790_v7, %v789_v6 }
 0x1db   : > { %v792_v10 = vrot.slane %v791_v9, 4 }
 0x1dd   : > { %v793_v11 = vadd.f32 %v792_v10, %v791_v9 }
 0x1df   : > { %v794_v12 = vrot.slane %v793_v11, 2 }
 0x1e1   : > { %v795_v13 = vadd.f32 %v794_v12, %v793_v11 }
 0x1e3   : > { %v796_v14 = vrot.slane %v795_v13, 1 }
 0x1e5   : > { %v797_v15 = vadd.f32 %v796_v14, %v795_v13 }
 0x1e7   : > { %v798_v16 = vmul.f32 %v797_v15, %v1939_v61 }
 0x1e9   : > { %v799_v19 = vadd.f32 1e-05, %v798_v16 }
 0x1eb   : > { %1675 = vrsqrt.f32 %v799_v19 }
 0x1f8   : > { %v1676_v20 = vpop.eup %1675 }
 0x1f9   : > { %v801_v22 = vmul.f32 %v1676_v20, %v783_v0  ;;  %v802_v23 = vmul.f32 %v1676_v20, %v784_v1 }
 0x1fb   : > { %v807_v25 = vmul.f32 %v1471_v21, %v801_v22  ;;  %v808_v26 = vmul.f32 %v1471_v21, %v802_v23 }
 0x1fd   : > { %v813_v28 = vadd.f32 %v1472_v24, %v807_v25  ;;  %v814_v29 = vadd.f32 %v1472_v24, %v808_v26 }
 0x1ff   : > { %vm815_vm5 = vcmp.gt.f32.partialorder %v813_v28, 0.0  ;;  %v817_v30 = vmul.f32 0.01, %v813_v28  ;;  %vm816_vm6 = vcmp.gt.f32.partialorder %v814_v29, 0.0  ;;  %v818_v31 = vmul.f32 0.01, %v814_v29 }
 0x201   : > { %v819_v32 = vsel %vm815_vm5, %v813_v28, %v817_v30  ;;  %v820_v33 = vsel %vm816_vm6, %v814_v29, %v818_v31 }
 0x202   : > { %1581 = vmatprep.mubr.msk.f32.mxu1 %vm771_vm4, %v819_v32  ;;  %1592 = vmatprep.mubr.msk.f32.mxu0 %vm771_vm4, %v819_v32 }
 0x203   : > { %1582 = vmatmul.mubr.msk.f32.vlgmr.msra.gmra.mxu1 %vm771_vm4, %v820_v33  ;;  %1593 = vmatmul.mubr.msk.f32.vlgmr.msra.gmra.mxu0 %vm771_vm4, %v820_v33 }
 0x204   : > { %1596 = vmatpush3.msra.mxu1 %v1915_v27  ;;  %1603 = vmatprep.mubr.msk.f32.mxu1 %vm771_vm4, %v819_v32 }
 0x205   : > { %1597 = vmatprep.subr.mxu1 %v1483_v34  ;;  %1608 = vmatprep.mubr.msk.bf16.mxu0 %vm1759_vm1, %v1758_v8 }
 0x206   : > { %1598 = vmatpush3.msra.mxu1 %v1483_v34 }
 0x207   : > { %1599 = vmatprep.subr.mxu1 %v1482_v35 }
 0x208   : > { %1600 = vmatpush3.msra.mxu1 %v1482_v35 }
 0x209   : > { %1601 = vmatprep.subr.mxu1 %v1481_v36 }
 0x20a   : > { %1602 = vmatpush3.msra.mxu1 %v1481_v36 }
 0x20b   : > { %1604 = vmatmul.mubr.msk.f32.vlgmr.msra.gmra.mxu1 %vm771_vm4, %v820_v33  ;;  %1612 = vmatprep.subr.bf16.mxu1 %v1758_v8  ;;  %v1491_v33 = vld [vmem:[%s1984_s24 + $0x2] ss:$0 sm:$0xff] }
 0x20c   : > { %1614 = vmatprep.mubr.msk.bf16.mxu1 %vm1759_vm1, %v1758_v8 }
 0x2c3   : > { %v1583_v27 = vpop.f32.mrf.mxu1  ;;  %v1594_v37 = vpop.f32.mrf.mxu0 }
 0x2c5   : > { %v898_v38 = vpop.f32.mrf.mxu1  ;;  %v978_v39 = vpop.f32.mrf.mxu0 }
 0x2c6   : > { %v1067_v40 = vpack.c.bf16 %v1583_v27, %v898_v38  ;;  %v1068_v41 = vpack.c.bf16 %v1594_v37, %v978_v39 }
 0x2c8   : > { %1607 = vmatpush3.bf16.msra.mxu0 %v1068_v41  ;;  %1613 = vmatpush3.bf16.msra.mxu1 %v1067_v40  ;;  %v1215_v40 = vpop.xlane.xlu0 %1214 }
 0x2c9   : > { %1618 = vmatprep.subr.mxu0 %v1758_v8  ;;  %v1289_v41 = vmax.f32 %v1215_v40, 1.0 }
 0x2cb   : > { %1609 = vmatmul.mubr.msk.bf16.vlgmr.msra.gmra.mxu0 %vm421_vm0, %v1891_v17  ;;  %1615 = vmatmul.mubr.msk.bf16.vlgmr.msra.gmra.mxu1 %vm421_vm0, %v1894_v18  ;;  %v1605_v44 = vpop.f32.mrf.mxu1 }
 0x2cc   : > { %1622 = vmatprep.mubr.msk.f32.mxu0 %vm1759_vm1, %v1758_v8 }
 0x2cd   : > { %v1058_v17 = vpop.f32.mrf.mxu1 }
 0x38b   : > { %v1103_v18 = vpop.f32.mrf.mxu0  ;;  %v1144_v46 = vpop.f32.mrf.mxu1 }
 0x38c   : > { %v1145_v47 = vadd.f32 %v1144_v46, %v1103_v18 }
 0x38d   : > { %v1610_v50 = vpop.f32.mrf.mxu0  ;;  %v1616_v51 = vpop.f32.mrf.mxu1 }
 0x38e   : > { %v1151_v52 = vadd.f32 %v1145_v47, %v1058_v17 }
 0x38f   : > { %v1106_v53 = vpop.f32.mrf.mxu0  ;;  %v1147_v54 = vpop.f32.mrf.mxu1 }
 0x390   : > { %v1157_v55 = vadd.f32 %v1489_v48, %v1151_v52  ;;  %v1148_v56 = vadd.f32 %v1147_v54, %v1106_v53 }
 0x391   : > { %v1611_v57 = vpop.f32.mrf.mxu0  ;;  %v1617_v58 = vpop.f32.mrf.mxu1 }
 0x392   : > { %v1152_v59 = vadd.f32 %v1605_v44, %v1148_v56  ;;  %v1161_v60 = vmul.f32 %v1930_v45, %v1157_v55 }
 0x394   : > { %v1158_v62 = vadd.f32 %v1489_v48, %v1152_v59  ;;  %v1163_v0 = vsel %vm421_vm0, %v1161_v60, 0.0 }
 0x396   : > { %v1162_v63 = vmul.f32 %v1933_v49, %v1158_v62 }
 0x398   : > { %v1164_v1 = vsel %vm421_vm0, %v1162_v63, 0.0 }
 0x399   : > { %v1165_v2 = vadd.f32 %v1164_v1, %v1163_v0 }
 0x39b   : > { %v1166_v3 = vrot.slane %v1165_v2, 4 }
 0x39d   : > { %v1167_v4 = vadd.f32 %v1166_v3, %v1165_v2 }
 0x39f   : > { %v1168_v5 = vrot.slane %v1167_v4, 2 }
 0x3a1   : > { %v1169_v6 = vadd.f32 %v1168_v5, %v1167_v4 }
 0x3a3   : > { %v1170_v7 = vrot.slane %v1169_v6, 1 }
 0x3a5   : > { %v1171_v9 = vadd.f32 %v1170_v7, %v1169_v6 }
 0x3a7   : > { %v1172_v10 = vmul.f32 %v1171_v9, %v1939_v61 }
 0x3a9   : > { %v1173_v11 = vsub.f32 %v1157_v55, %v1172_v10  ;;  %v1174_v12 = vsub.f32 %v1158_v62, %v1172_v10 }
 0x3ab   : > { %v1175_v13 = vmul.f32 %v1173_v11, %v1173_v11  ;;  %v1176_v14 = vmul.f32 %v1174_v12, %v1174_v12 }
 0x3ad   : > { %v1177_v15 = vmul.f32 %v1930_v45, %v1175_v13  ;;  %v1178_v16 = vmul.f32 %v1933_v49, %v1176_v14  ;;  %v1490_v45 = vld [vmem:[%s1984_s24 + $0x1] ss:$0 sm:$0xff] }
 0x3af   : > { %v1179_v19 = vsel %vm421_vm0, %v1177_v15, 0.0  ;;  %v1180_v20 = vsel %vm421_vm0, %v1178_v16, 0.0 }
 0x3b0   : > { %v1181_v21 = vadd.f32 %v1180_v20, %v1179_v19 }
 0x3b2   : > { %v1182_v22 = vrot.slane %v1181_v21, 4 }
 0x3b4   : > { %v1183_v23 = vadd.f32 %v1182_v22, %v1181_v21 }
 0x3b6   : > { %v1184_v24 = vrot.slane %v1183_v23, 2 }
 0x3b8   : > { %v1185_v25 = vadd.f32 %v1184_v24, %v1183_v23 }
 0x3ba   : > { %v1186_v26 = vrot.slane %v1185_v25, 1 }
 0x3bc   : > { %v1187_v28 = vadd.f32 %v1186_v26, %v1185_v25 }
 0x3be   : > { %v1188_v29 = vmul.f32 %v1187_v28, %v1939_v61 }
 0x3c0   : > { %v1189_v30 = vadd.f32 1e-05, %v1188_v29 }
 0x3c2   : > { %1677 = vrsqrt.f32 %v1189_v30 }
 0x3c3   : > { %1679 = vrcp.f32 %v1289_v41 }
 0x3cf   : > { %v1678_v31 = vpop.eup %1677 }
 0x3d0   : > { %v1192_v32 = vmul.f32 %v1678_v31, %v1174_v12  ;;  %v1191_v49 = vmul.f32 %v1678_v31, %v1173_v11  ;;  %v1680_v43 = vpop.eup %1679 }
 0x3d2   : > { %v1198_v34 = vmul.f32 %v1490_v45, %v1192_v32  ;;  %v1197_v35 = vmul.f32 %v1490_v45, %v1191_v49 }
 0x3d4   : > { %v1204_v36 = vadd.f32 %v1491_v33, %v1198_v34  ;;  %v1203_v27 = vadd.f32 %v1491_v33, %v1197_v35 }
 0x3d6   : > { %vm1206_vm8 = vcmp.gt.f32.partialorder %v1204_v36, 0.0  ;;  %v1208_v37 = vmul.f32 0.01, %v1204_v36  ;;  %v1207_v38 = vmul.f32 0.01, %v1203_v27  ;;  %vm1205_vm9 = vcmp.gt.f32.partialorder %v1203_v27, 0.0 }
 0x3d8   : > { %v1210_v39 = vsel %vm1206_vm8, %v1204_v36, %v1208_v37  ;;  %v1209_v61 = vsel %vm1205_vm9, %v1203_v27, %v1207_v38 }
 0x3d9   : > { %1619 = vmatpush3.msra.mxu0 %v1210_v39 }
 0x3da   : > { %1620 = vmatprep.subr.mxu0 %v1758_v8 }
 0x3db   : > { %1621 = vmatpush3.msra.mxu0 %v1209_v61 }
 0x3dc   : > { %1623 = vmatmul.mubr.msk.f32.vlgmr.msra.gmra.mxu0 %vm421_vm0, %v1975_v42 }
 0x49c   : > { %v1285_v44 = vpop.f32.mrf.mxu0 }
 0x49d   : > { %v1291_v17 = vmul.f32 %v1680_v43, %v1285_v44 }
 0x49e   : > { %v1624_v8 = vpop.f32.mrf.mxu0 }
 0x49f   : > { %1292 = vst.msk [vmem:[%s362_s27] sm:$0x3] %vm1212_vm7, %v1291_v17 }
 0x4a0   : > { %1706 = shalt.err (!%p1703_p8)
}
 0x4a1   : > { %s1707_s23 = scalar_lea.hbm %s2007_s9, 32  ;;  %s1711_s25 = scalar_lea.hbm %s2051_s8, 64 }
 0x4a2   : > { %p1708_p9 = scmp.ne.s32.totalorder %s2007_s9, %s1707_s23  ;;  %p1712_p0 = scmp.lt.s32.totalorder %s2007_s9, %s2051_s8 }
 0x4a3   : > { %p1713_p1 = scmp.lt.s32.totalorder %s1711_s25, %s1707_s23 }
 0x4a4   : > { %p1709_p12 = pnand %p1708_p9, %p1847_p10 }
 0x4a5   : > { %p1714_p2 = por %p1713_p1, %p1712_p0 }
 0x4a6   : > { %p1710_p13 = pneg %p1709_p12 }
 0x4a8   : > { %p1715_p3 = pnand %p1714_p2, %p1710_p13 }
 0x4aa   : > { %1718 = shalt.err (!%p1715_p3)
}
 0x4ab   : > { %1629 = dma.vmem_to_hbm [thread:$0]  (%p1847_p10), %s1308_s28, 32, %s2007_s9, %s1294_s14  }
 0x4ac PF: > { %p1635_p4 = scmp.ge.s32.totalorder %s1755_s12, 2  ;;  %s1319_s29 = sand.u32 1, %s1743_s10  }
 0x4ad   : > { %s1320_s30 = scalar_lea.sflag [#allocation5], %s1319_s29 }
 0x4ae   : > { %p1632_p5 = pnand %p1635_p4, %p1851_p11 }
 0x4b0   : > { %p1633_p6 = pneg %p1632_p5 }
 0x4b2   : > { %1738 = dma.done.wait (%p1633_p6), %s1320_s30, 32  }
 0x4b3   : > { %1740 = vsyncadd (%p1633_p6), %s1320_s30, 4294967264  ;;  %p24_p7 = scmp.ge.s32.totalorder %s1834_s15, 4   ;;  %s2054_s10 = smov %s1747_s11 }
 0x4b4   : > { %s2055_s11 = smov %s1751_s0  ;;  %s2056_s0 = smov %s1845_s18 }
 0x4b5   : > { %s2057_s12 = smov %s1834_s15  ;;  %26 = sbr.rel (!%p24_p7) target bundleno = 18 (0x12), region = 106 }
 0x4ba   :  { %1325 = vsyncpa [#allocation5], 1 }
 0x4bb   :  { %1327 = vsyncpa [#allocation5 + $0x1], 1 }

</bundles_post_ra>
